<compile_context>
chip_gen: v7x
topology: tpu7x:2x2x1
jax: 0.10.0
libtpu: 0.0.40
codegen_flags: <defaults>
</compile_context>

<pallas_src>
import functools

import jax
import jax.numpy as jnp
from jax.experimental import pallas as pl
from jax.experimental.pallas import tpu as pltpu


# ---------------------------------------------------------------------------
# Pallas kernel: a = relu(Wg^T g + Wx^T x + b) ; psi = sigmoid(wp^T a + bp)
#                out = x * psi     (channels on sublanes, pixels on lanes)
# ---------------------------------------------------------------------------
def _attention_gate_kernel(g_ref, x_ref, wg_t_ref, wx_t_ref, b_int_ref,
                           wp_t_ref, bp_ref, out_ref, *, approx_sigmoid):
    g = g_ref[0]                                          # (F_g, TL), native I/O dtype
    x = x_ref[0]                                          # (F_l, TL), native I/O dtype

    # 1x1 convs as channel matmuls with the spatial dim lane-dense.  bf16 tiles
    # go straight to the MXU (f32 accumulate) — no upcast pass over the big
    # tiles.  The activation is a single fused VPU expression.
    a = jnp.maximum(
        jnp.dot(wg_t_ref[...], g, preferred_element_type=jnp.float32)
        + jnp.dot(wx_t_ref[...], x, preferred_element_type=jnp.float32)
        + b_int_ref[...],
        0.0)                                              # (F_int, TL) f32

    # psi projection: (1, F_int) @ (F_int, TL) -> (1, TL); scalar bias from SMEM.
    logits = jnp.dot(wp_t_ref[...], a, preferred_element_type=jnp.float32) + bp_ref[0]
    if approx_sigmoid:
        # exp + approximate reciprocal both live on the EUP slot, off the VALU
        # critical path (used for the bf16 bandwidth-optimal configuration).
        psi = pl.reciprocal(1.0 + jnp.exp(-logits), approx=True)
    else:
        psi = jax.nn.sigmoid(logits)                      # exact, for strict f32 checks

    # Gate: multiply in the I/O dtype (bf16 VALU on v6e/v7x; v5e gets compiler
    # inserted casts, equivalent to doing it in f32 there).
    out_ref[0] = (x * psi.astype(x.dtype)).astype(out_ref.dtype)


# ---------------------------------------------------------------------------
# Generation-aware VMEM budgets + lane-tile selection
# ---------------------------------------------------------------------------
def _vmem_budget():
    """(vmem_limit_bytes, lane-tile window budget) derived from the chip."""
    try:
        cap = pltpu.get_tpu_info().vmem_capacity_bytes    # 128 MiB v5e/v6e, 64 MiB v7x
    except Exception:
        cap = 64 * 1024 * 1024                            # conservative (v7x-sized) fallback
    vmem_limit = min(64 * 1024 * 1024, (cap * 3) // 4)    # v5e/v6e: 64 MiB, v7x: 48 MiB
    window_budget = vmem_limit // 3                       # ~21 MiB / ~16 MiB of windows
    return vmem_limit, window_budget


def _pick_lane_tile(HW_pad, N, F_g, F_l, F_int, io_itemsize, window_budget,
                    min_steps=4):
    """Largest 128-multiple lane tile whose VMEM footprint fits the budget,
    capped so the grid keeps enough steps to feed both v7x TensorCores."""
    per_lane = (2 * (F_g + 2 * F_l) * io_itemsize         # double-buffered g/x/out windows
                + (F_int + 4) * 4)                        # f32 `a` + logits/psi rows + margin
    tl = (window_budget // per_lane) // 128 * 128
    tl = int(max(128, min(HW_pad, tl)))
    want_tiles = -(-min_steps // max(1, N))               # ceil(min_steps / N)
    if want_tiles > 1:
        cap = max(128, (HW_pad // want_tiles) // 128 * 128)
        tl = min(tl, cap)                                  # best effort: >= min_steps grid steps
    return tl


# ---------------------------------------------------------------------------
# pallas_call wrapper (operates on (N, C, HW) with HW already a 128-multiple)
# ---------------------------------------------------------------------------
def attention_gate_pallas(g3, x3, wg_t, wx_t, b_int, wp_t, bp, *,
                          lane_tile=None, approx_sigmoid=False):
    N, F_g, HW = g3.shape
    _, F_l, _ = x3.shape
    F_int = wg_t.shape[0]

    vmem_limit, window_budget = _vmem_budget()
    tl = lane_tile if lane_tile is not None else _pick_lane_tile(
        HW, N, F_g, F_l, F_int, g3.dtype.itemsize, window_budget)
    grid = (N, pl.cdiv(HW, tl))

    rows = lambda n, j: (n, 0, j)
    full = lambda n, j: (0, 0)

    kernel = functools.partial(_attention_gate_kernel, approx_sigmoid=approx_sigmoid)

    return pl.pallas_call(
        kernel,
        out_shape=jax.ShapeDtypeStruct((N, F_l, HW), x3.dtype),
        grid_spec=pltpu.PrefetchScalarGridSpec(
            num_scalar_prefetch=0,
            grid=grid,
            in_specs=[
                # If profiling shows exposed DMA with the big tiles, try
                # pipeline_mode=pl.Buffered(3) on these two specs.
                pl.BlockSpec((1, F_g, tl), rows),          # g tile (lane-dense)
                pl.BlockSpec((1, F_l, tl), rows),          # x tile (lane-dense)
                pl.BlockSpec((F_int, F_g), full),          # Wg^T (BN-folded)
                pl.BlockSpec((F_int, F_l), full),          # Wx^T (BN-folded)
                pl.BlockSpec((F_int, 1), full),            # fused bias bg+bx (f32)
                pl.BlockSpec((1, F_int), full),            # wpsi^T (BN-folded, f32)
                pl.BlockSpec(memory_space=pltpu.MemorySpace.SMEM),  # bpsi scalar
            ],
            out_specs=pl.BlockSpec((1, F_l, tl), rows),
        ),
        compiler_params=pltpu.CompilerParams(
            dimension_semantics=("parallel", "parallel"),
            vmem_limit_bytes=vmem_limit,
        ),
    )(g3, x3, wg_t, wx_t, b_int, wp_t, bp)


# ---------------------------------------------------------------------------
# Host-side glue: BN folding, NCHW plumbing (reshape + optional pad only)
# ---------------------------------------------------------------------------
def fold_bn_into_conv(w, b, gamma, beta, mean, var, eps=1e-5):
    """Fold eval-mode BatchNorm into a 1x1 conv expressed as a (C_in, C_out) matmul."""
    scale = gamma / jnp.sqrt(var + eps)                   # (C_out,)
    w_eff = w * scale[None, :]                            # (C_in, C_out)
    b_eff = (b - mean) * scale + beta                     # (C_out,)
    return w_eff, b_eff


def make_params(key, F_g, F_l, F_int):
    ks = jax.random.split(key, 12)

    def bn(k, c):
        kg, kb, km, kv = jax.random.split(k, 4)
        gamma = 1.0 + 0.1 * jax.random.normal(kg, (c,), jnp.float32)
        beta = 0.1 * jax.random.normal(kb, (c,), jnp.float32)
        mean = 0.1 * jax.random.normal(km, (c,), jnp.float32)
        var = 1.0 + 0.1 * jax.random.uniform(kv, (c,), jnp.float32)
        return gamma, beta, mean, var

    # Conv weights in (C_in, C_out) matmul layout (PyTorch (C_out,C_in,1,1) squeezed/T).
    wg = 0.2 * jax.random.normal(ks[0], (F_g, F_int), jnp.float32)
    bg = 0.1 * jax.random.normal(ks[1], (F_int,), jnp.float32)
    wx = 0.2 * jax.random.normal(ks[2], (F_l, F_int), jnp.float32)
    bx = 0.1 * jax.random.normal(ks[3], (F_int,), jnp.float32)
    wp = 0.2 * jax.random.normal(ks[4], (F_int, 1), jnp.float32)
    bp = 0.1 * jax.random.normal(ks[5], (1,), jnp.float32)

    wg_f, bg_f = fold_bn_into_conv(wg, bg, *bn(ks[6], F_int))
    wx_f, bx_f = fold_bn_into_conv(wx, bx, *bn(ks[7], F_int))
    wp_f, bp_f = fold_bn_into_conv(wp, bp, *bn(ks[8], 1))

    wg_t = wg_f.T                                         # (F_int, F_g)
    wx_t = wx_f.T                                         # (F_int, F_l)
    b_int = (bg_f + bx_f).reshape(F_int, 1)               # fused intermediate bias
    wp_t = wp_f.T                                         # (1, F_int)
    bp_s = bp_f.reshape(1)                                # (1,) SMEM scalar
    return wg_t, wx_t, b_int, wp_t, bp_s


def attention_gate(g_nchw, x_nchw, params, *, io_dtype=None, lane_tile=None,
                   approx_sigmoid=False):
    """NCHW entry point matching the PyTorch module's forward (no transposes)."""
    wg_t, wx_t, b_int, wp_t, bp = params
    N, F_g, H, W = g_nchw.shape
    _, F_l, _, _ = x_nchw.shape
    HW = H * W
    HW_pad = -(-HW // 128) * 128                          # pad spatial axis to 128-multiple

    g3 = g_nchw.reshape(N, F_g, HW)                       # free (contiguous) reshape
    x3 = x_nchw.reshape(N, F_l, HW)
    if io_dtype is not None:                              # bf16 I/O fast path
        g3 = g3.astype(io_dtype)
        x3 = x3.astype(io_dtype)
        wg_t = wg_t.astype(io_dtype)
        wx_t = wx_t.astype(io_dtype)
    if HW_pad != HW:
        pad = ((0, 0), (0, 0), (0, HW_pad - HW))
        g3 = jnp.pad(g3, pad)                             # zero pad: finite through sigmoid
        x3 = jnp.pad(x3, pad)

    out3 = attention_gate_pallas(g3, x3, wg_t, wx_t, b_int, wp_t, bp,
                                 lane_tile=lane_tile, approx_sigmoid=approx_sigmoid)
    if HW_pad != HW:
        out3 = out3[..., :HW]
    return out3.reshape(N, F_l, H, W)


def attention_gate_ref(g_nchw, x_nchw, params):
    """Plain-JAX reference (same folded params) for correctness checks."""
    wg_t, wx_t, b_int, wp_t, bp = params
    g = jnp.transpose(g_nchw, (0, 2, 3, 1))
    x = jnp.transpose(x_nchw, (0, 2, 3, 1))
    g1 = jnp.einsum("nhwc,dc->nhwd", g, wg_t)
    x1 = jnp.einsum("nhwc,dc->nhwd", x, wx_t)
    a = jnp.maximum(g1 + x1 + b_int[:, 0], 0.0)
    psi = jax.nn.sigmoid(jnp.einsum("nhwd,od->nhwo", a, wp_t) + bp[0])
    return jnp.transpose(x * psi, (0, 3, 1, 2))


if __name__ == "__main__":
    N, F_g, F_l, F_int, H, W = 2, 4, 4, 8, 16, 16         # HW = 256 -> grid (2, 2)

    key = jax.random.PRNGKey(0)
    kg, kx, kp = jax.random.split(key, 3)
    g_in = jax.random.normal(kg, (N, F_g, H, W), jnp.float32)
    x_in = jax.random.normal(kx, (N, F_l, H, W), jnp.float32)
    params = make_params(kp, F_g, F_l, F_int)

    ref = attention_gate_ref(g_in, x_in, params)

    # f32 I/O path, exact sigmoid: strict check vs the plain-JAX reference.
    out_f32 = jax.block_until_ready(attention_gate(g_in, x_in, params))
    assert out_f32.shape == (N, F_l, H, W)
    assert jnp.allclose(out_f32, ref, atol=1e-4, rtol=1e-4), "f32 mismatch vs reference"

    # bf16 I/O path (bandwidth-optimal configuration) with approximate sigmoid.
    out_bf16 = jax.block_until_ready(
        attention_gate(g_in, x_in, params, io_dtype=jnp.bfloat16, approx_sigmoid=True))
    assert out_bf16.shape == (N, F_l, H, W)
    assert jnp.allclose(out_bf16.astype(jnp.float32), ref, atol=3e-2, rtol=3e-2), \
        "bf16 mismatch vs reference"

    # Non-128-multiple spatial size exercises the host-side padding path.
    Hs, Ws = 10, 10                                       # HW = 100 -> padded to 128
    g_s = jax.random.normal(kg, (N, F_g, Hs, Ws), jnp.float32)
    x_s = jax.random.normal(kx, (N, F_l, Hs, Ws), jnp.float32)
    out_s = jax.block_until_ready(attention_gate(g_s, x_s, params))
    ref_s = attention_gate_ref(g_s, x_s, params)
    assert out_s.shape == (N, F_l, Hs, Ws)
    assert jnp.allclose(out_s, ref_s, atol=1e-4, rtol=1e-4), "padded-path mismatch"

    print("KERNEL_OK")
</pallas_src>

<mosaic_0001>
module attributes {stable_mosaic.version = 11 : i64} {
  func.func @_attention_gate_kernel(%arg0: i32, %arg1: i32, %arg2: memref<1x4x128xf32, #tpu.memory_space<vmem>>, %arg3: memref<1x4x128xf32, #tpu.memory_space<vmem>>, %arg4: memref<8x4xf32, #tpu.memory_space<vmem>>, %arg5: memref<8x4xf32, #tpu.memory_space<vmem>>, %arg6: memref<8x1xf32, #tpu.memory_space<vmem>>, %arg7: memref<1x8xf32, #tpu.memory_space<vmem>>, %arg8: memref<1xf32, #tpu.memory_space<smem>>, %arg9: memref<1x4x128xf32, #tpu.memory_space<vmem>>) attributes {dimension_semantics = [#tpu.dimension_semantics<parallel>, #tpu.dimension_semantics<parallel>], iteration_bounds = array<i64: 2, 2>, scalar_prefetch = 0 : i64, scratch_operands = 0 : i64, tpu.core_type = #tpu.core_type<tc>, window_params = [{transform_indices = @transform_0, window_bounds = array<i64: 1, 4, 128>}, {transform_indices = @transform_1, window_bounds = array<i64: 1, 4, 128>}, {pipeline_mode = #tpu.pipeline_mode<synchronous>, transform_indices = @transform_2, window_bounds = array<i64: 8, 4>}, {pipeline_mode = #tpu.pipeline_mode<synchronous>, transform_indices = @transform_3, window_bounds = array<i64: 8, 4>}, {pipeline_mode = #tpu.pipeline_mode<synchronous>, transform_indices = @transform_4, window_bounds = array<i64: 8, 1>}, {pipeline_mode = #tpu.pipeline_mode<synchronous>, transform_indices = @transform_5, window_bounds = array<i64: 1, 8>}, {transform_indices = @transform_6, window_bounds = array<i64: 1>}, {transform_indices = @transform_7, window_bounds = array<i64: 1, 4, 128>}]} {
    %c0 = arith.constant 0 : index
    %c0_0 = arith.constant 0 : index
    %c0_1 = arith.constant 0 : index
    %0 = vector.load %arg2[%c0, %c0_0, %c0_1] : memref<1x4x128xf32, #tpu.memory_space<vmem>>, vector<1x4x128xf32>
    %1 = vector.shape_cast %0 : vector<1x4x128xf32> to vector<4x128xf32>
    %c0_2 = arith.constant 0 : index
    %c0_3 = arith.constant 0 : index
    %c0_4 = arith.constant 0 : index
    %2 = vector.load %arg3[%c0_2, %c0_3, %c0_4] : memref<1x4x128xf32, #tpu.memory_space<vmem>>, vector<1x4x128xf32>
    %3 = vector.shape_cast %2 : vector<1x4x128xf32> to vector<4x128xf32>
    %c0_5 = arith.constant 0 : index
    %c0_6 = arith.constant 0 : index
    %4 = vector.load %arg4[%c0_5, %c0_6] : memref<8x4xf32, #tpu.memory_space<vmem>>, vector<8x4xf32>
    %cst = arith.constant dense<0.000000e+00> : vector<8x128xf32>
    %5 = tpu.matmul %4, %1, %cst {dimension_numbers = #tpu.dot_dimension_numbers<[1], [0], [0], [1], [0, 0, 1, 1], [], []>} : vector<8x4xf32>, vector<4x128xf32>, vector<8x128xf32> -> vector<8x128xf32>
    %c0_7 = arith.constant 0 : index
    %c0_8 = arith.constant 0 : index
    %6 = vector.load %arg5[%c0_7, %c0_8] : memref<8x4xf32, #tpu.memory_space<vmem>>, vector<8x4xf32>
    %cst_9 = arith.constant dense<0.000000e+00> : vector<8x128xf32>
    %7 = tpu.matmul %6, %3, %cst_9 {dimension_numbers = #tpu.dot_dimension_numbers<[1], [0], [0], [1], [0, 0, 1, 1], [], []>} : vector<8x4xf32>, vector<4x128xf32>, vector<8x128xf32> -> vector<8x128xf32>
    %8 = arith.addf %5, %7 : vector<8x128xf32>
    %c0_10 = arith.constant 0 : index
    %c0_11 = arith.constant 0 : index
    %9 = vector.load %arg6[%c0_10, %c0_11] : memref<8x1xf32, #tpu.memory_space<vmem>>, vector<8x1xf32>
    %10 = vector.broadcast %9 : vector<8x1xf32> to vector<8x128xf32>
    %11 = arith.addf %8, %10 : vector<8x128xf32>
    %cst_12 = arith.constant 0.000000e+00 : f32
    %12 = vector.broadcast %cst_12 : f32 to vector<8x128xf32>
    %13 = arith.maximumf %11, %12 : vector<8x128xf32>
    %c0_13 = arith.constant 0 : index
    %c0_14 = arith.constant 0 : index
    %14 = vector.load %arg7[%c0_13, %c0_14] : memref<1x8xf32, #tpu.memory_space<vmem>>, vector<1x8xf32>
    %cst_15 = arith.constant dense<0.000000e+00> : vector<1x128xf32>
    %15 = tpu.matmul %14, %13, %cst_15 {dimension_numbers = #tpu.dot_dimension_numbers<[1], [0], [0], [1], [0, 0, 1, 1], [], []>} : vector<1x8xf32>, vector<8x128xf32>, vector<1x128xf32> -> vector<1x128xf32>
    %c0_16 = arith.constant 0 : index
    %16 = memref.load %arg8[%c0_16] : memref<1xf32, #tpu.memory_space<smem>>
    %17 = vector.broadcast %16 : f32 to vector<1x128xf32>
    %18 = arith.addf %15, %17 : vector<1x128xf32>
    %19 = arith.negf %18 : vector<1x128xf32>
    %20 = math.exp %19 : vector<1x128xf32>
    %cst_17 = arith.constant 1.000000e+00 : f32
    %21 = vector.broadcast %cst_17 : f32 to vector<1x128xf32>
    %22 = arith.addf %21, %20 : vector<1x128xf32>
    %23 = arith.divf %21, %22 : vector<1x128xf32>
    %24 = vector.broadcast %23 : vector<1x128xf32> to vector<4x128xf32>
    %25 = arith.mulf %3, %24 : vector<4x128xf32>
    %c0_18 = arith.constant 0 : index
    %c0_19 = arith.constant 0 : index
    %c0_20 = arith.constant 0 : index
    %26 = vector.load %arg9[%c0_18, %c0_19, %c0_20] : memref<1x4x128xf32, #tpu.memory_space<vmem>>, vector<1x4x128xf32>
    %27 = vector.shape_cast %26 : vector<1x4x128xf32> to vector<4x128xf32>
    %28 = vector.shape_cast %25 : vector<4x128xf32> to vector<1x4x128xf32>
    tpu.vector_store %arg9[%c0_18, %c0_19, %c0_20], %28 {strides = array<i32>} : memref<1x4x128xf32, #tpu.memory_space<vmem>>, vector<1x4x128xf32>,
    return
  }
  func.func @transform_0(%arg0: i32, %arg1: i32) -> (i32, i32, i32) {
    %c0_i32 = arith.constant 0 : i32
    %c0_i32_0 = arith.constant 0 : i32
    return %arg0, %c0_i32, %arg1 : i32, i32, i32
  }
  func.func @transform_1(%arg0: i32, %arg1: i32) -> (i32, i32, i32) {
    %c0_i32 = arith.constant 0 : i32
    %c0_i32_0 = arith.constant 0 : i32
    return %arg0, %c0_i32, %arg1 : i32, i32, i32
  }
  func.func @transform_2(%arg0: i32, %arg1: i32) -> (i32, i32) {
    %c0_i32 = arith.constant 0 : i32
    %c0_i32_0 = arith.constant 0 : i32
    %c0_i32_1 = arith.constant 0 : i32
    return %c0_i32, %c0_i32_0 : i32, i32
  }
  func.func @transform_3(%arg0: i32, %arg1: i32) -> (i32, i32) {
    %c0_i32 = arith.constant 0 : i32
    %c0_i32_0 = arith.constant 0 : i32
    %c0_i32_1 = arith.constant 0 : i32
    return %c0_i32, %c0_i32_0 : i32, i32
  }
  func.func @transform_4(%arg0: i32, %arg1: i32) -> (i32, i32) {
    %c0_i32 = arith.constant 0 : i32
    %c0_i32_0 = arith.constant 0 : i32
    %c0_i32_1 = arith.constant 0 : i32
    return %c0_i32, %c0_i32_0 : i32, i32
  }
  func.func @transform_5(%arg0: i32, %arg1: i32) -> (i32, i32) {
    %c0_i32 = arith.constant 0 : i32
    %c0_i32_0 = arith.constant 0 : i32
    %c0_i32_1 = arith.constant 0 : i32
    return %c0_i32, %c0_i32_0 : i32, i32
  }
  func.func @transform_6(%arg0: i32, %arg1: i32) -> i32 {
    %c0_i32 = arith.constant 0 : i32
    %c0_i32_0 = arith.constant 0 : i32
    return %c0_i32 : i32
  }
  func.func @transform_7(%arg0: i32, %arg1: i32) -> (i32, i32, i32) {
    %c0_i32 = arith.constant 0 : i32
    %c0_i32_0 = arith.constant 0 : i32
    return %arg0, %c0_i32, %arg1 : i32, i32, i32
  }
}

</mosaic_0001>

<bundles_post_ra>
// kernel: tpu_custom_call.1
= control target key start
LH: loop header
LB: loop body
LE: loop exit
PB: predicated region body
PF: predicated region fallthrough
CT: control target
= control target key end

     0   :  { %s1120_s0 = inlined_call_operand.vmem [shape: f32[2,4,256], index: 0, kind: input, shape index: {}]   ;;  %s1121_s1 = inlined_call_operand.vmem [shape: f32[2,4,256], index: 1, kind: input, shape index: {}]   ;;  %s1122_s2 = inlined_call_operand.vmem [shape: f32[8,4], index: 2, kind: input, shape index: {}]   ;;  %s1123_s3 = inlined_call_operand.vmem [shape: f32[8,4], index: 3, kind: input, shape index: {}]   ;;  %s1124_s4 = inlined_call_operand.vmem [shape: f32[8,1], index: 4, kind: input, shape index: {}]   ;;  %s1125_s5 = inlined_call_operand.vmem [shape: f32[1,8], index: 5, kind: input, shape index: {}]   ;;  %s1126_s6 = inlined_call_operand.<no memory space> [shape: f32[1], index: 6, kind: input, shape index: {}]   ;;  %s1127_s7 = inlined_call_operand.hbm [shape: f32[2,4,256], index: 7, kind: output, shape index: {}]  }
   0x1   :  { %1131 = sst [smem:[#allocation9_spill]] %s1124_s4 }
   0x2   :  { %12 = sst [smem:[#allocation2]] %s1126_s6 }
   0x3   :  { %13 = vsyncpa [#allocation4], 0 }
   0x4   :  { %15 = vsyncpa [#allocation4 + $0x1], 0  ;;  %s965_s26 = smov 0   ;;  %s967_s27 = smov 0  }
   0x5   :  { %s969_s28 = smov 0   ;;  %s971_s29 = smov 0  }
   0x6   :  { %s973_s30 = smov 0   ;;  %s975_s8 = smov 0  }
   0x7   :  { %s977_s9 = smov 0   ;;  %s979_s10 = smov 0  }
   0x8 LB: > { %1132 = sst [smem:[#allocation6_spill]] %s912_s9  ;;  %s701_s6 = sadd.s32 4294967295, %s916_s10   ;;  %s916_s10 = sphi %s979_s10, %s21_s10   ;;  %s912_s9 = sphi %s977_s9, %s1140_s9   ;;  %s908_s8 = sphi %s975_s8, %s1145_s8   ;;  %s904_s30 = sphi %s973_s30, %s1138_s30   ;;  %s900_s29 = sphi %s971_s29, %s1144_s29   ;;  %s896_s28 = sphi %s969_s28, %s1143_s28   ;;  %s892_s27 = sphi %s967_s27, %s1142_s27   ;;  %s888_s26 = sphi %s965_s26, %s1141_s26  }
   0x9   : > { %s702_s11 = sadd.s32 4294967294, %s916_s10   ;;  %s30_s12 = sadd.s32 1, %s908_s8 }
   0xa   : > { %p31_p0 = scmp.ge.s32.totalorder %s30_s12, 2  ;;  %s33_s13 = sadd.s32 1, %s912_s9 }
   0xb   : > { %p213_p1 = scmp.ne.s32.totalorder %s896_s28, %s892_s27  ;;  %p214_p2 = scmp.eq.s32.totalorder %s701_s6, 3 }
   0xc   : > { %s1147_s12 = smov (%p31_p0, %s30_s12), 0  ;;  %s1149_s13 = smov (!%p31_p0, %s33_s13), %s912_s9 }
   0xd   : > { %1133 = sst [smem:[#allocation7_spill]] %s1147_s12  ;;  %s199_s14 = ssub.s32 %s908_s8, %s1147_s12 }
   0xe   : > { %p1016_p3 = por %p214_p2, %p213_p1  ;;  %p35_p4 = scmp.ge.s32.totalorder %s1149_s13, 2 }
   0xf   : > { %p219_p5 = scmp.ne.s32.totalorder %s892_s27, %s888_s26  ;;  %p220_p6 = scmp.eq.s32.totalorder %s702_s11, 3 }
  0x10   : > { %p705_p7 = scmp.ge.s32.totalorder %s916_s10, 1  ;;  %s1151_s13 = smov (%p35_p4, %s1149_s13), 0 }
  0x11   : > { %1135 = sst [smem:[#allocation8_spill]] %s1151_s13  ;;  %p1025_p8 = por %p220_p6, %p219_p5 }
  0x12   : > { %p275_p9 = scmp.lt.s32.totalorder %s916_s10, 5  ;;  %s198_s17 = ssub.s32 %s912_s9, %s1151_s13 }
  0x13   : > { %s203_s18 = sadd.s32 1, %s896_s28  ;;  %s200_s19 = sor.u32 %s199_s14, %s198_s17 }
  0x14   : > { %p276_p10 = pnand %p705_p7, %p275_p9  ;;  %p201_p11 = scmp.eq.s32.totalorder %s200_s19, 0 }
  0x15   : > { %p318_p12 = scmp.lt.s32.totalorder (!%p276_p10), %s904_s30, 1  ;;  %p320_p13 = scmp.lt.s32.totalorder (!%p276_p10), %s900_s29, 1  ;;  %v918_v0 = vmov (!%p276_p10), 0.0   ;;  %vm919_vm0 = vmmov (!%p276_p10), 0   ;;  %v920_v2 = vmov (!%p276_p10), 0   ;;  %vm342_vm1 = vcmask (!%p276_p10), 1043456  }
  0x16   : > { %s1034_s20 = scalar_select %p201_p11, %s896_s28, %s203_s18  }
  0x17   : > { %279 = sbr.rel (%p276_p10) target bundleno = 516 (0x204), region = 48  ;;  %728 = vmatprep.subr.mxu0 (!%p276_p10), %v918_v0  ;;  %733 = vmatprep.subr.mxu1 (!%p276_p10), %v918_v0  ;;  %s1137_s4 = sld [smem:[#allocation9_spill]] (!%p276_p10)  ;;  %v337_v3 = vld [vmem:[%s1123_s3] sm:$0xff] (!%p276_p10)  ;;  %vm338_vm2 = vcmask (!%p276_p10), 31744   ;;  %vm503_vm3 = vcmask (!%p276_p10), 64512   ;;  %v583_v23 = vlaneseq (!%p276_p10) }
  0x18   : > { %730 = vmatprep.mubr.msk.f32.mxu0 (!%p276_p10), %vm919_vm0, %v918_v0  ;;  %735 = vmatprep.mubr.msk.f32.mxu1 (!%p276_p10), %vm919_vm0, %v918_v0  ;;  %v336_v4 = vld [vmem:[%s1122_s2] sm:$0xff] (!%p276_p10)  ;;  %s501_s12 = sld [smem:[#allocation2]] (!%p276_p10)  ;;  %s315_s13 = sand.u32 (!%p276_p10), 1, %s892_s27  }
  0x19   : > { %817 = vset.pattern.permute.xlu0 (!%p276_p10), %v920_v2  ;;  %v500_v15 = vld [vmem:[%s1125_s5] sm:$0x1] (!%p276_p10)  ;;  %v584_v24 = vshrl.u32 (!%p276_p10), %v583_v23, 7 }
  0x1b   : > { %v585_v25 = vsub.s32 (!%p276_p10), 0, %v584_v24 }
  0x1d   : > { %v492_v1 = vld [vmem:[%s1137_s4] sm:$0xff] (!%p276_p10) }
  0x1e   : > { %s319_s23 = scalar_select %p318_p12, %s904_s30, 1  ;;  %495 = vperm.xlu0 %817, %v492_v1   ;;  %v502_v16 = vstv %s501_s12 }
  0x1f   : > { %s321_s24 = scalar_select %p320_p13, %s900_s29, 1 }
  0x20   : > { %s707_s25 = sshll.u32 %s319_s23, 1  ;;  %s706_s23 = sshll.u32 %s315_s13, 2 }
  0x21   : > { %s323_s6 = sadd.s32 %s707_s25, %s321_s24  ;;  %s718_s24 = sshll.u32 %s904_s30, 1 }
  0x22   : > { %s708_s11 = sshll.u32 %s323_s6, 2  ;;  %s601_s25 = sadd.s32 %s900_s29, %s718_s24 }
  0x23   : > { %s333_s18 = scalar_lea.vmem %s1121_s1, %s708_s11  ;;  %s325_s22 = scalar_lea.vmem %s1120_s0, %s708_s11 }
  0x24   : > { %v335_v5 = vld [vmem:[%s333_s18] sm:$0xf]  ;;  %s719_s6 = sshll.u32 %s601_s25, 6  ;;  %s317_s11 = scalar_lea.vmem [#allocation3], %s706_s23 }
  0x25   : > { %v334_v6 = vld [vmem:[%s325_s22] sm:$0xf]  ;;  %729 = vmatpush3.msk.msra.mxu0 %vm342_vm1, %v335_v5  ;;  %s605_s14 = sshll.u32 %s317_s11, 4  ;;  %s1067_s19 = scalar_lea.hbm %s1127_s7, %s719_s6  ;;  %s1069_s14 = int_to_ptr.vmem [resolvable:$true] %s605_s14 }
  0x26   : > { %734 = vmatpush3.msk.msra.mxu1 %vm342_vm1, %v334_v6  ;;  %731 = vmatmul.mubr.msk.f32.vlgmr.msra.gmra.mrb[0].mxu0 %vm338_vm2, %v337_v3  ;;  %s590_s30 = scalar_lea.sflag [#allocation4], %s315_s13  ;;  %s822_s21 = scalar_lea.vmem %s1069_s14, 64 }
  0x27   : > { %736 = vmatmul.mubr.msk.f32.vlgmr.msra.gmra.mrb[0].mxu1 %vm338_vm2, %v336_v4  ;;  %738 = vmatprep.subr.mxu0 %v918_v0  ;;  %p823_p0 = scmp.ne.s32.totalorder %s1069_s14, %s822_s21  ;;  %s921_s29 = smov [#allocation3]  }
  0x28   : > { %740 = vmatprep.mubr.msk.f32.mxu0 %vm919_vm0, %v918_v0  ;;  %s826_s22 = sshll.u32 %s921_s29, 4  ;;  %s827_s22 = int_to_ptr.vmem [resolvable:$false] %s826_s22 }
  0x29   : > { %p824_p1 = pnand %p823_p0, %p1016_p3  ;;  %s828_s4 = scalar_lea.vmem %s827_s22, 128 }
  0x2a   : > { %p829_p4 = scmp.lt.s32.totalorder %s1069_s14, %s827_s22  ;;  %p830_p5 = scmp.lt.s32.totalorder %s828_s4, %s822_s21 }
  0x2b   : > { %p825_p2 = pneg %p824_p1 }
  0x2c   : > { %p831_p6 = por %p830_p5, %p829_p4 }
  0x2e   : > { %p832_p7 = pnand %p831_p6, %p825_p2 }
  0x9d   : > { %v496_v7 = vpop.permute.xlu0 %495 }
  0xf9   : > { %v412_v8 = vpop.f32.mrb[0].mxu0 }
  0xfa   : > { %v488_v9 = vpop.f32.mrb[0].mxu1  ;;  %v732_v11 = vpop.f32.mrb[1].mxu0 }
  0xfb   : > { %v489_v10 = vadd.f32 %v488_v9, %v412_v8  ;;  %v737_v12 = vpop.f32.mrb[1].mxu1 }
  0xfd   : > { %v498_v13 = vadd.f32 %v496_v7, %v489_v10 }
  0xff   : > { %v499_v14 = vmax.f32 %v498_v13, 0.0 }
 0x101   : > { %739 = vmatpush3.msra.mxu0 %v499_v14 }
 0x102   : > { %741 = vmatmul.mubr.msk.f32.vlgmr.msra.gmra.mrb[2].mxu0 %vm503_vm3, %v500_v15 }
 0x1d5   : > { %v573_v17 = vpop.f32.mrb[2].mxu0 }
 0x1d6   : > { %v574_v18 = vadd.f32 %v573_v17, %v502_v16  ;;  %v742_v19 = vpop.f32.mrb[3].mxu0 }
 0x1d8   : > { %v716_v20 = vmul.f32 -1.442695, %v574_v18 }
 0x1da   : > { %818 = vpow2.f32 %v716_v20 }
 0x1e4   : > { %v819_v21 = vpop.eup %818 }
 0x1e5   : > { %v580_v22 = vadd.f32 1.0, %v819_v21 }
 0x1e7   : > { %820 = vrcp.f32 %v580_v22 }
 0x1f1   : > { %v821_v26 = vpop.eup %820 }
 0x1f2   : > { %v586_v27 = vrot.slane %v821_v26, %v585_v25 }
 0x1f4   : > { %v587_v28 = vmul.f32 %v586_v27, %v335_v5 }
 0x1f6   : > { %588 = vst [vmem:[%s317_s11] sm:$0xf] %v587_v28 }
 0x1f7   : > { %835 = shalt.err (!%p832_p7)
}
 0x1f8   : > { %s836_s9 = scalar_lea.hbm %s1067_s19, 64  ;;  %s840_s23 = scalar_lea.hbm %s1127_s7, 256 }
 0x1f9   : > { %p837_p9 = scmp.ne.s32.totalorder %s1067_s19, %s836_s9  ;;  %p841_p12 = scmp.lt.u32.totalorder %s1067_s19, %s1127_s7 }
 0x1fa   : > { %p842_p13 = scmp.lt.u32.totalorder %s840_s23, %s836_s9  ;;  %p844_p1 = scmp.lt.u32.totalorder %s836_s9, %s1067_s19 }
 0x1fb   : > { %p838_p10 = pnand %p837_p9, %p1016_p3 }
 0x1fc   : > { %p843_p0 = por %p842_p13, %p841_p12 }
 0x1fd   : > { %p839_p11 = pneg %p838_p10 }
 0x1fe   : > { %p845_p2 = por %p844_p1, %p843_p0 }
 0x200   : > { %p846_p4 = pnand %p845_p2, %p839_p11 }
 0x202   : > { %849 = shalt.err (!%p846_p4)
}
 0x203   : > { %743 = dma.vmem_to_hbm [thread:$0]  (%p1016_p3), %s1069_s14, 64, %s1067_s19, %s590_s30  }
 0x204 PF: > { %p749_p5 = scmp.ge.s32.totalorder %s916_s10, 2  ;;  %s617_s6 = sand.u32 1, %s888_s26  }
 0x205   : > { %s618_s11 = scalar_lea.sflag [#allocation4], %s617_s6 }
 0x206   : > { %p746_p6 = pnand %p749_p5, %p1025_p8 }
 0x208   : > { %883 = dma.done.wait (!%p746_p6), %s618_s11, 64  }
 0x209   : > { %885 = vsyncadd (!%p746_p6), %s618_s11, 4294967232  ;;  %s21_s10 = sadd.s32 1, %s916_s10   ;;  %s1138_s30 = sld [smem:[#allocation6_spill]] }
 0x20a   : > { %p18_p7 = scmp.ge.s32.totalorder %s21_s10, 6   ;;  %s1139_s15 = sld [smem:[#allocation7_spill]] }
 0x20b   : > { %s1140_s9 = sld [smem:[#allocation8_spill]]  ;;  %s1141_s26 = smov %s892_s27 }
 0x20c   : > { %s1142_s27 = smov %s896_s28  ;;  %s1143_s28 = smov %s1034_s20 }
 0x20d   : > { %s1144_s29 = smov %s908_s8  ;;  %20 = sbr.rel (!%p18_p7) target bundleno = 8 (0x8), region = 86 }
 0x210   : > { %s1145_s8 = smov %s1139_s15 }
 0x214   :  { %623 = vsyncpa [#allocation4], 1 }
 0x215   :  { %625 = vsyncpa [#allocation4 + $0x1], 1 }

</bundles_post_ra>
